<compile_context>
chip_gen: v7x
topology: tpu7x:2x2x1
jax: 0.10.0
libtpu: 0.0.40
codegen_flags: <defaults>
</compile_context>

<pallas_src>
import functools

import jax
import jax.numpy as jnp
from jax.experimental import pallas as pl
from jax.experimental.pallas import tpu as pltpu


LANE = 128
BF16_SUBLANE = 16  # bf16 packs 2 rows/sublane -> row tiles must be x16


def _round_up(x, m):
    return ((x + m - 1) // m) * m


# ----------------------------- Pallas kernel --------------------------------


def mlp_kernel(x_ref, w1_ref, b1_ref, w2_ref, b2_ref, o_ref, h_ref):
    """One (row-tile i, vocab-tile j) grid step of Linear -> ReLU -> Linear.

    x_ref:  (TM, D_IN)   bf16     w1_ref: (D_IN, H_PAD) bf16   b1_ref: (1, H_PAD) f32
    w2_ref: (H_PAD, TV)  bf16     b2_ref: (1, TV)       f32
    o_ref:  (TM, TV)     f32      h_ref:  (TM, H_PAD)   f32 VMEM scratch
    """
    # First matmul + ReLU only on the first vocab tile of each row tile; the
    # scratch persists across the (inner, "arbitrary") vocab axis, so all
    # later vocab tiles reuse it instead of recomputing matmul-1.
    @pl.when(pl.program_id(1) == 0)
    def _():
        h = jnp.dot(x_ref[...], w1_ref[...],
                    preferred_element_type=jnp.float32)
        h_ref[...] = jnp.maximum(h + b1_ref[...], 0.0)

    out = jnp.dot(h_ref[...].astype(w2_ref.dtype), w2_ref[...],
                  preferred_element_type=jnp.float32)
    o_ref[...] = (out + b2_ref[...]).astype(o_ref.dtype)


def _choose_row_tile(n, tm_default=256):
    # No small-N halving: one MXU-sized tile beats several tiny grid steps
    # (~0.35us pipeline overhead each).  Multiple of 16 for bf16 row packing.
    return max(BF16_SUBLANE,
               min(_round_up(tm_default, BF16_SUBLANE),
                   _round_up(n, BF16_SUBLANE)))


def _vmem_limit_bytes(tm, d_in, h_pad, tv):
    bf, f32 = 2, 4
    resident = (
        2 * tm * d_in * bf        # x block (double-buffered)
        + 2 * d_in * h_pad * bf   # w1 (constant index map, still 2 buffers)
        + 2 * h_pad * f32         # b1
        + 2 * h_pad * tv * bf     # w2 tile
        + 2 * tv * f32            # b2 tile
        + 2 * tm * tv * f32       # output tile
        + tm * h_pad * f32        # h scratch
    )
    # 2x headroom for compiler temporaries; clamp to [32 MiB, 64 MiB] so the
    # plan stays inside v7x's 64 MiB physical VMEM and raises v5e's 16 MiB
    # default scoped limit.
    return int(min(max(2 * resident, 32 << 20), 64 << 20))


def mlp_head_pallas(x, w1, b1, w2, b2, *, tm=256, tv=256):
    """bf16 Linear -> ReLU -> Linear head: x (N, D_IN) -> logits (N, V_PAD) f32."""
    n, d_in = x.shape
    h_pad = w1.shape[1]
    v_pad = w2.shape[1]
    assert w1.shape[0] == d_in
    assert h_pad % LANE == 0 and v_pad % LANE == 0
    assert n % BF16_SUBLANE == 0, "pad rows to a multiple of 16 in the wrapper"

    tm = _choose_row_tile(n, tm)
    tv = min(_round_up(tv, LANE), v_pad)
    grid = (pl.cdiv(n, tm), pl.cdiv(v_pad, tv))  # rows outer, vocab inner

    return pl.pallas_call(
        mlp_kernel,
        out_shape=jax.ShapeDtypeStruct((n, v_pad), jnp.float32),
        grid_spec=pltpu.PrefetchScalarGridSpec(
            num_scalar_prefetch=0,
            grid=grid,
            in_specs=[
                pl.BlockSpec((tm, d_in), lambda i, j: (i, 0)),     # x
                pl.BlockSpec((d_in, h_pad), lambda i, j: (0, 0)),  # w1
                pl.BlockSpec((1, h_pad), lambda i, j: (0, 0)),     # b1
                pl.BlockSpec((h_pad, tv), lambda i, j: (0, j)),    # w2
                pl.BlockSpec((1, tv), lambda i, j: (0, j)),        # b2
            ],
            out_specs=pl.BlockSpec((tm, tv), lambda i, j: (i, j)),
            scratch_shapes=[pltpu.VMEM((tm, h_pad), jnp.float32)],  # h cache
        ),
        compiler_params=pltpu.CompilerParams(
            # The vocab axis carries scratch state across j -> "arbitrary";
            # the row axis stays "parallel" for megacore sharding on v7x.
            dimension_semantics=("parallel", "arbitrary"),
            vmem_limit_bytes=_vmem_limit_bytes(tm, d_in, h_pad, tv),
        ),
    )(x, w1, b1, w2, b2)


# --------------------------- Model (glue in JAX) -----------------------------


class MLPParams:
    """Deterministic parameters matching the PyTorch module shapes, plus
    kernel-ready copies built once: output dims zero-padded to 128-lane
    multiples (mathematically inert) and matmul operands cast to bf16."""

    def __init__(self, key, vocab_size, markov_order, emb_dim, hid_dim):
        self.vocab_size = vocab_size
        self.markov_order = markov_order
        self.emb_dim = emb_dim
        self.hid_dim = hid_dim

        d_in = emb_dim * markov_order
        self.d_in = d_in
        self.h_pad = _round_up(hid_dim, LANE)
        self.v_pad = _round_up(vocab_size, LANE)

        k_emb, k_w1, k_b1, k_w2, k_b2 = jax.random.split(key, 5)

        # nn.Embedding(vocab_size + 1, emb_dim): N(0, 1)
        self.emb_table = jax.random.normal(
            k_emb, (vocab_size + 1, emb_dim), jnp.float32)
        self.emb_table_bf = self.emb_table.astype(jnp.bfloat16)

        # nn.Linear(d_in, hid_dim): U(-1/sqrt(fan_in), 1/sqrt(fan_in)),
        # stored transposed as (in, out) so the kernel does x @ W + b.
        lim1 = 1.0 / (d_in ** 0.5)
        self.w1 = jax.random.uniform(
            k_w1, (d_in, hid_dim), jnp.float32, -lim1, lim1)
        self.b1 = jax.random.uniform(
            k_b1, (1, hid_dim), jnp.float32, -lim1, lim1)

        # nn.Linear(hid_dim, vocab_size)
        lim2 = 1.0 / (hid_dim ** 0.5)
        self.w2 = jax.random.uniform(
            k_w2, (hid_dim, vocab_size), jnp.float32, -lim2, lim2)
        self.b2 = jax.random.uniform(
            k_b2, (1, vocab_size), jnp.float32, -lim2, lim2)

        # Kernel-ready copies (padding rows/cols contribute exactly 0).
        self.w1_p = (jnp.zeros((d_in, self.h_pad), jnp.float32)
                     .at[:, :hid_dim].set(self.w1)).astype(jnp.bfloat16)
        self.b1_p = (jnp.zeros((1, self.h_pad), jnp.float32)
                     .at[:, :hid_dim].set(self.b1))
        self.w2_p = (jnp.zeros((self.h_pad, self.v_pad), jnp.float32)
                     .at[:hid_dim, :vocab_size].set(self.w2)).astype(jnp.bfloat16)
        self.b2_p = (jnp.zeros((1, self.v_pad), jnp.float32)
                     .at[:, :vocab_size].set(self.b2))
        # TODO(synk): at production vocab sizes on v7x, consider fp8 storage
        # for w2_p with a dequant scale folded into the second dot.


def build_context(idx, emb_table, markov_order, vocab_size):
    """Reproduce the torch.roll / idx[:,0]=vocab_size context construction.
    Returns (B, T, emb_dim*markov_order) in the embedding table's dtype."""
    embs = []
    cur = idx
    for _ in range(markov_order):
        embs.append(jnp.take(emb_table, cur, axis=0))  # (B, T, E)
        cur = jnp.roll(cur, 1, axis=1)
        cur = cur.at[:, 0].set(vocab_size)
    embs = list(reversed(embs))
    return jnp.concatenate(embs, axis=-1)


@functools.partial(jax.jit, static_argnums=(6, 7))
def mlp_forward(idx, emb_table, w1_p, b1_p, w2_p, b2_p,
                markov_order, vocab_size):
    b, t = idx.shape
    d_in = w1_p.shape[0]
    x = build_context(idx, emb_table, markov_order, vocab_size)  # (B,T,d_in) bf16
    n = b * t
    x2d = x.reshape(n, d_in)
    n_pad = _round_up(n, BF16_SUBLANE)
    if n_pad != n:  # zero rows -> garbage logits that are sliced off below
        x2d = jnp.concatenate(
            [x2d, jnp.zeros((n_pad - n, d_in), x2d.dtype)], axis=0)
    logits_pad = mlp_head_pallas(x2d, w1_p, b1_p, w2_p, b2_p)  # (n_pad, V_PAD)
    # NOTE: for a fused downstream loss, prefer keeping the lane-dense
    # (n_pad, V_PAD) slab and masking padded classes instead of this slice.
    logits = logits_pad[:n, :vocab_size].reshape(b, t, vocab_size)
    # TODO(synk): cross_entropy loss path (targets is not None) not implemented;
    # default forward (targets=None) returns loss=None, matching PyTorch.
    return logits, None


# --------------------------------- Main --------------------------------------


if __name__ == "__main__":
    vocab_size, markov_order, emb_dim, hid_dim = 27, 3, 16, 32
    B, T = 2, 8

    key = jax.random.PRNGKey(0)
    k_params, k_idx = jax.random.split(key)

    params = MLPParams(k_params, vocab_size, markov_order, emb_dim, hid_dim)
    idx = jax.random.randint(k_idx, (B, T), 0, vocab_size, dtype=jnp.int32)

    logits, loss = mlp_forward(
        idx, params.emb_table_bf, params.w1_p, params.b1_p, params.w2_p,
        params.b2_p, markov_order, vocab_size,
    )
    logits = jax.block_until_ready(logits)

    # Reference with the SAME bf16 quantization of the matmul operands and f32
    # accumulation (precision=HIGHEST), so kernel-vs-reference differences are
    # only f32 summation order (plus rare 1-ULP bf16 rounding of h).
    hp = jax.lax.Precision.HIGHEST
    x_ctx = build_context(idx, params.emb_table, markov_order, vocab_size)
    xq = x_ctx.reshape(B * T, -1).astype(jnp.bfloat16).astype(jnp.float32)
    w1q = params.w1.astype(jnp.bfloat16).astype(jnp.float32)
    w2q = params.w2.astype(jnp.bfloat16).astype(jnp.float32)
    h_ref = jnp.maximum(jnp.dot(xq, w1q, precision=hp) + params.b1, 0.0)
    hq = h_ref.astype(jnp.bfloat16).astype(jnp.float32)
    logits_ref = (jnp.dot(hq, w2q, precision=hp) + params.b2
                  ).reshape(B, T, vocab_size)

    assert logits.shape == (B, T, vocab_size)
    assert loss is None
    assert jnp.allclose(logits, logits_ref, atol=2e-2, rtol=2e-2)

    print("KERNEL_OK")
</pallas_src>

<mosaic_0001>
module attributes {stable_mosaic.version = 11 : i64} {
  func.func @mlp_kernel(%arg0: i32, %arg1: i32, %arg2: memref<16x48xbf16, #tpu.memory_space<vmem>>, %arg3: memref<48x128xbf16, #tpu.memory_space<vmem>>, %arg4: memref<1x128xf32, #tpu.memory_space<vmem>>, %arg5: memref<128x128xbf16, #tpu.memory_space<vmem>>, %arg6: memref<1x128xf32, #tpu.memory_space<vmem>>, %arg7: memref<16x128xf32, #tpu.memory_space<vmem>>, %arg8: memref<16x128xf32, #tpu.memory_space<vmem>>) attributes {dimension_semantics = [#tpu.dimension_semantics<parallel>, #tpu.dimension_semantics<arbitrary>], iteration_bounds = array<i64: 1, 1>, scalar_prefetch = 0 : i64, scratch_operands = 1 : i64, tpu.core_type = #tpu.core_type<tc>, window_params = [{transform_indices = @transform_0, window_bounds = array<i64: 16, 48>}, {pipeline_mode = #tpu.pipeline_mode<synchronous>, transform_indices = @transform_1, window_bounds = array<i64: 48, 128>}, {pipeline_mode = #tpu.pipeline_mode<synchronous>, transform_indices = @transform_2, window_bounds = array<i64: 1, 128>}, {transform_indices = @transform_3, window_bounds = array<i64: 128, 128>}, {transform_indices = @transform_4, window_bounds = array<i64: 1, 128>}, {transform_indices = @transform_5, window_bounds = array<i64: 16, 128>}]} {
    %c0_i32 = arith.constant 0 : i32
    %0 = arith.cmpi eq, %arg1, %c0_i32 : i32
    %1 = arith.extui %0 : i1 to i32
    %c0_i32_0 = arith.constant 0 : i32
    %2 = arith.cmpi ne, %1, %c0_i32_0 : i32
    scf.if %2 {
      %c0_8 = arith.constant 0 : index
      %c0_9 = arith.constant 0 : index
      %11 = vector.load %arg2[%c0_8, %c0_9] : memref<16x48xbf16, #tpu.memory_space<vmem>>, vector<16x48xbf16>
      %c0_10 = arith.constant 0 : index
      %c0_11 = arith.constant 0 : index
      %12 = vector.load %arg3[%c0_10, %c0_11] : memref<48x128xbf16, #tpu.memory_space<vmem>>, vector<48x128xbf16>
      %cst_12 = arith.constant dense<0.000000e+00> : vector<16x128xf32>
      %13 = tpu.matmul %11, %12, %cst_12 {dimension_numbers = #tpu.dot_dimension_numbers<[1], [0], [0], [1], [0, 0, 1, 1], [], []>} : vector<16x48xbf16>, vector<48x128xbf16>, vector<16x128xf32> -> vector<16x128xf32>
      %c0_13 = arith.constant 0 : index
      %c0_14 = arith.constant 0 : index
      %14 = vector.load %arg4[%c0_13, %c0_14] : memref<1x128xf32, #tpu.memory_space<vmem>>, vector<1x128xf32>
      %15 = vector.broadcast %14 : vector<1x128xf32> to vector<16x128xf32>
      %16 = arith.addf %13, %15 : vector<16x128xf32>
      %cst_15 = arith.constant 0.000000e+00 : f32
      %17 = vector.broadcast %cst_15 : f32 to vector<16x128xf32>
      %18 = arith.maximumf %16, %17 : vector<16x128xf32>
      %c0_16 = arith.constant 0 : index
      %c0_17 = arith.constant 0 : index
      %19 = vector.load %arg8[%c0_16, %c0_17] : memref<16x128xf32, #tpu.memory_space<vmem>>, vector<16x128xf32>
      tpu.vector_store %arg8[%c0_16, %c0_17], %18 {strides = array<i32>} : memref<16x128xf32, #tpu.memory_space<vmem>>, vector<16x128xf32>,
    } else {
    }
    %c0 = arith.constant 0 : index
    %c0_1 = arith.constant 0 : index
    %3 = vector.load %arg8[%c0, %c0_1] : memref<16x128xf32, #tpu.memory_space<vmem>>, vector<16x128xf32>
    %4 = arith.truncf %3 : vector<16x128xf32> to vector<16x128xbf16>
    %c0_2 = arith.constant 0 : index
    %c0_3 = arith.constant 0 : index
    %5 = vector.load %arg5[%c0_2, %c0_3] : memref<128x128xbf16, #tpu.memory_space<vmem>>, vector<128x128xbf16>
    %cst = arith.constant dense<0.000000e+00> : vector<16x128xf32>
    %6 = tpu.matmul %4, %5, %cst {dimension_numbers = #tpu.dot_dimension_numbers<[1], [0], [0], [1], [0, 0, 1, 1], [], []>} : vector<16x128xbf16>, vector<128x128xbf16>, vector<16x128xf32> -> vector<16x128xf32>
    %c0_4 = arith.constant 0 : index
    %c0_5 = arith.constant 0 : index
    %7 = vector.load %arg6[%c0_4, %c0_5] : memref<1x128xf32, #tpu.memory_space<vmem>>, vector<1x128xf32>
    %8 = vector.broadcast %7 : vector<1x128xf32> to vector<16x128xf32>
    %9 = arith.addf %6, %8 : vector<16x128xf32>
    %c0_6 = arith.constant 0 : index
    %c0_7 = arith.constant 0 : index
    %10 = vector.load %arg7[%c0_6, %c0_7] : memref<16x128xf32, #tpu.memory_space<vmem>>, vector<16x128xf32>
    tpu.vector_store %arg7[%c0_6, %c0_7], %9 {strides = array<i32>} : memref<16x128xf32, #tpu.memory_space<vmem>>, vector<16x128xf32>,
    return
  }
  func.func @transform_0(%arg0: i32, %arg1: i32) -> (i32, i32) {
    %c0_i32 = arith.constant 0 : i32
    %c0_i32_0 = arith.constant 0 : i32
    return %arg0, %c0_i32 : i32, i32
  }
  func.func @transform_1(%arg0: i32, %arg1: i32) -> (i32, i32) {
    %c0_i32 = arith.constant 0 : i32
    %c0_i32_0 = arith.constant 0 : i32
    %c0_i32_1 = arith.constant 0 : i32
    return %c0_i32, %c0_i32_0 : i32, i32
  }
  func.func @transform_2(%arg0: i32, %arg1: i32) -> (i32, i32) {
    %c0_i32 = arith.constant 0 : i32
    %c0_i32_0 = arith.constant 0 : i32
    %c0_i32_1 = arith.constant 0 : i32
    return %c0_i32, %c0_i32_0 : i32, i32
  }
  func.func @transform_3(%arg0: i32, %arg1: i32) -> (i32, i32) {
    %c0_i32 = arith.constant 0 : i32
    %c0_i32_0 = arith.constant 0 : i32
    return %c0_i32, %arg1 : i32, i32
  }
  func.func @transform_4(%arg0: i32, %arg1: i32) -> (i32, i32) {
    %c0_i32 = arith.constant 0 : i32
    %c0_i32_0 = arith.constant 0 : i32
    return %c0_i32, %arg1 : i32, i32
  }
  func.func @transform_5(%arg0: i32, %arg1: i32) -> (i32, i32) {
    %c0_i32 = arith.constant 0 : i32
    return %arg0, %arg1 : i32, i32
  }
}

</mosaic_0001>

<bundles_post_ra>
// kernel: mlp_forward.1
= control target key start
LH: loop header
LB: loop body
LE: loop exit
PB: predicated region body
PF: predicated region fallthrough
CT: control target
= control target key end

     0   :  { %v305_v0 = vmov 0.0   ;;  %vm306_vm0 = vmmov 0   ;;  %vm63_vm1 = vcmask 392192   ;;  %s385_s1 = inlined_call_operand.vmem [shape: bf16[48,128], index: 1, kind: input, shape index: {}]   ;;  %s386_s3 = inlined_call_operand.vmem [shape: bf16[128,128], index: 3, kind: input, shape index: {}]   ;;  %s387_s0 = inlined_call_operand.vmem [shape: bf16[16,48], index: 0, kind: input, shape index: {}]   ;;  %s388_s2 = inlined_call_operand.vmem [shape: f32[1,128], index: 2, kind: input, shape index: {}]   ;;  %s389_s4 = inlined_call_operand.vmem [shape: f32[1,128], index: 4, kind: input, shape index: {}]   ;;  %s390_s5 = inlined_call_operand.vmem [shape: f32[16,128], index: 5, kind: output, shape index: {}]  }
   0x1   :  { %261 = vmatprep.subr.bf16.mxu0 %v305_v0  ;;  %v293_v1 = vld [vmem:[%s385_s1] sm:$0xff]   ;;  %267 = vmatprep.mubr.msk.bf16.mxu0 %vm306_vm0, %v305_v0  ;;  %v294_v2 = vld [vmem:[%s385_s1 + $0x8] sm:$0xff]   ;;  %v295_v4 = vld [vmem:[%s385_s1 + $0x10] sm:$0xff]  }
   0x2   :  { %271 = vmatprep.subr.bf16.mxu1 %v305_v0  ;;  %287 = vmatprep.mubr.msk.bf16.mxu1 %vm306_vm0, %v305_v0  ;;  %v297_v3 = vld [vmem:[%s386_s3] sm:$0xff]   ;;  %v298_v5 = vld [vmem:[%s386_s3 + $0x8] sm:$0xff]   ;;  %v299_v7 = vld [vmem:[%s386_s3 + $0x10] sm:$0xff]  }
   0x3   :  { %262 = vmatpush3.bf16.msra.mxu0 %v293_v1  ;;  %272 = vmatpush3.bf16.msra.mxu1 %v297_v3  ;;  %v296_v6 = vld [vmem:[%s387_s0] sm:$0xff]   ;;  %v300_v8 = vld [vmem:[%s386_s3 + $0x18] sm:$0xff]   ;;  %v302_v10 = vld [vmem:[%s386_s3 + $0x28] sm:$0xff]  }
   0x4   :  { %263 = vmatprep.subr.bf16.mxu0 %v305_v0  ;;  %273 = vmatprep.subr.bf16.mxu1 %v305_v0  ;;  %v301_v9 = vld [vmem:[%s386_s3 + $0x20] sm:$0xff]   ;;  %v303_v11 = vld [vmem:[%s386_s3 + $0x30] sm:$0xff]   ;;  %v304_v12 = vld [vmem:[%s386_s3 + $0x38] sm:$0xff]  }
   0x5   :  { %v233_v13 = vld [vmem:[%s388_s2] ss:$0 sm:$0xff] }
   0x6   :  { %v239_v23 = vld [vmem:[%s389_s4] ss:$0 sm:$0xff] }
   0x7   :  { %264 = vmatpush3.bf16.msra.mxu0 %v294_v2  ;;  %274 = vmatpush3.bf16.msra.mxu1 %v298_v5 }
   0x8   :  { %265 = vmatprep.subr.bf16.mxu0 %v305_v0  ;;  %275 = vmatprep.subr.bf16.mxu1 %v305_v0 }
   0xb   :  { %266 = vmatpush3.bf16.msra.mxu0 %v295_v4  ;;  %276 = vmatpush3.bf16.msra.mxu1 %v299_v7 }
   0xc   :  { %277 = vmatprep.subr.bf16.mxu1 %v305_v0 }
   0xe   :  { %268 = vmatmul.mubr.msk.bf16.vlgmr.msra.gmra.mrb[0].mxu0 %vm63_vm1, %v296_v6 }
   0xf   :  { %278 = vmatpush3.bf16.msra.mxu1 %v300_v8 }
  0x10   :  { %279 = vmatprep.subr.bf16.mxu1 %v305_v0 }
  0x13   :  { %280 = vmatpush3.bf16.msra.mxu1 %v301_v9 }
  0x14   :  { %281 = vmatprep.subr.bf16.mxu1 %v305_v0 }
  0x17   :  { %282 = vmatpush3.bf16.msra.mxu1 %v302_v10 }
  0x18   :  { %283 = vmatprep.subr.bf16.mxu1 %v305_v0 }
  0x1b   :  { %284 = vmatpush3.bf16.msra.mxu1 %v303_v11 }
  0x1c   :  { %285 = vmatprep.subr.bf16.mxu1 %v305_v0 }
  0x1f   :  { %286 = vmatpush3.bf16.msra.mxu1 %v304_v12 }
  0xe1   :  { %v101_v14 = vpop.f32.mrb[0].mxu0 }
  0xe2   :  { %v102_v15 = vadd.f32 %v233_v13, %v101_v14  ;;  %v269_v16 = vpop.f32.mrb[1].mxu0 }
  0xe3   :  { %v104_v17 = vpop.f32.mrb[2].mxu0 }
  0xe4   :  { %v105_v18 = vadd.f32 %v233_v13, %v104_v17  ;;  %v270_v19 = vpop.f32.mrb[3].mxu0  ;;  %v108_v20 = vmax.f32 %v102_v15, 0.0 }
  0xe6   :  { %v109_v21 = vmax.f32 %v105_v18, 0.0 }
  0xe8   :  { %v114_v22 = vpack.c.bf16 %v109_v21, %v108_v20 }
  0xea   :  { %288 = vmatmul.mubr.bf16.vlgmr.msra.gmra.mrb[0].mxu1 %v114_v22 }
 0x1bd   :  { %v220_v24 = vpop.f32.mrb[0].mxu1 }
 0x1be   :  { %v221_v25 = vadd.f32 %v239_v23, %v220_v24  ;;  %v289_v26 = vpop.f32.mrb[1].mxu1 }
 0x1bf   :  { %v223_v27 = vpop.f32.mrb[2].mxu1 }
 0x1c0   :  { %227 = vst [vmem:[%s390_s5] sm:$0xff] %v221_v25  ;;  %v224_v28 = vadd.f32 %v239_v23, %v223_v27  ;;  %v290_v29 = vpop.f32.mrb[3].mxu1 }
 0x1c2   :  { %228 = vst [vmem:[%s390_s5 + $0x8] sm:$0xff] %v224_v28 }

</bundles_post_ra>
